<compile_context>
chip_gen: v6e
topology: v6e:2x2x1
jax: 0.10.0
libtpu: 0.0.40
codegen_flags: <defaults>
</compile_context>

<pallas_src>
import functools

import jax
import jax.numpy as jnp
from jax import lax
from jax.experimental import pallas as pl
from jax.experimental.pallas import tpu as pltpu

# ----------------------------- model sizes (small) ---------------------------
BATCH = 2
SEQ = 8
HIDDEN = 64          # stand-in for BERT hidden_size (768 in the real module)
LSTM_HIDDEN = 32     # stand-in for lstm_hidden_size (128 in the real module)
NUM_CLASSES = 3
VOCAB = 100

OUT_PAD = 128        # lane-dense padded logits width (sliced to NUM_CLASSES)


def _pick_batch_tile(batch: int) -> int:
    """Fill the MXU M dim (target <=128 rows) but keep >=2 grid steps when the
    batch allows, so v7x's second TensorCore is engaged via the "parallel"
    grid axis. Minimum 8 rows so f32 sublanes / MXU M are filled."""
    bt = 8
    while bt < 128 and bt < batch:
        bt *= 2
    while bt > 8 and pl.cdiv(batch, bt) < 2:
        bt //= 2
    return bt


# ------------------------------- Pallas kernel --------------------------------
def _bilstm_fc_kernel(
    x_ref,      # [BT*T, H]     bf16  rows ordered (time, batch-in-tile)
    w_ih_ref,   # [H, 8*Hl]     bf16  concat(fwd, bwd) input->gate weights (i,f,o,g)
    b_ih_ref,   # [1, 8*Hl]     f32   concat(b_ih_f + b_hh_f, b_ih_b + b_hh_b)
    w_hh_ref,   # [Hl, 4*Hl]    bf16  forward-dir hidden->gate weights (i,f,o,g)
    w_fc_ref,   # [2*Hl, Cp]    bf16  zero-padded classifier weight
    b_fc_ref,   # [1, Cp]       f32   zero-padded classifier bias
    out_ref,    # [BT, Cp]      f32   lane-dense padded logits
    gx_ref,     # [BT*T, 8*Hl]  f32   VMEM scratch: hoisted input projection
    *,
    seq_len: int,
):
    T = seq_len
    BT = out_ref.shape[0]
    Hl = w_hh_ref.shape[0]
    G = 4 * Hl

    # ---- hoisted input projection: ONE bf16 MXU GEMM for both directions and
    # all timesteps; biases folded here so the loop body has no broadcast. ----
    gx_ref[...] = (
        jnp.dot(x_ref[...], w_ih_ref[...], preferred_element_type=jnp.float32)
        + b_ih_ref[...]
    )

    w_hh = w_hh_ref[...]                                     # hoisted load

    def gate_math(gates, c_prev):
        # Gate columns were permuted offline to (i, f, o, g): one sigmoid push
        # over 3*Hl lanes + one tanh push per step (plus the tanh(c)).
        sfo = jax.nn.sigmoid(gates[:, : 3 * Hl])
        g = jnp.tanh(gates[:, 3 * Hl:])
        c = sfo[:, Hl: 2 * Hl] * c_prev + sfo[:, :Hl] * g
        h = sfo[:, 2 * Hl:] * jnp.tanh(c)
        return h, c

    zeros = jnp.zeros((BT, Hl), jnp.float32)

    # ---- backward direction at output position T-1 (its FIRST step, zero
    # initial state => no W_hh_b term). Computed up front so its EUP/MXU work
    # is filler under the forward chain; its classifier half is accumulated
    # here so there is no lane-concat at the end. -----------------------------
    g_last = gx_ref[pl.ds((T - 1) * BT, BT), :]              # contiguous slab
    h_b, _ = gate_math(g_last[:, G:], zeros)
    acc = (
        jnp.dot(h_b.astype(w_fc_ref.dtype), w_fc_ref[pl.ds(Hl, Hl), :],
                preferred_element_type=jnp.float32)
        + b_fc_ref[...]
    )

    # ---- forward recurrence: only the small h @ W_hh matmul + f32 gate math
    # sit on the serial critical path; gate reads are contiguous. ------------
    def step(t, carry):
        h, c = carry
        start = t * BT
        if not isinstance(start, int):                       # fori path
            start = pl.multiple_of(start, BT)
        g_t = gx_ref[pl.ds(start, BT), :]                    # [BT, 8*Hl] f32
        rec = jnp.dot(h.astype(w_hh.dtype), w_hh,
                      preferred_element_type=jnp.float32)    # [BT, 4*Hl]
        return gate_math(g_t[:, :G] + rec, c)

    if T <= 16:
        h, c = zeros, zeros
        for t in range(T):                                   # static unroll
            h, c = step(t, (h, c))
    else:
        # Bounded unroll at realistic T: the h->h chain is serial, so full
        # unrolling only bloats the instruction stream.
        # TODO(synk): at real Hl=128 keep W_hh resident across steps via
        # pltpu.matmul_push_rhs/matmul_acc_lhs instead of re-pushing per dot.
        h, c = lax.fori_loop(0, T, step, (zeros, zeros), unroll=8)

    # ---- classifier (forward half) into the lane-dense padded output -------
    out_ref[...] = (
        jnp.dot(h.astype(w_fc_ref.dtype), w_fc_ref[pl.ds(0, Hl), :],
                preferred_element_type=jnp.float32)
        + acc
    )


# --------------------------------- wrapper ------------------------------------
def _reorder_gates(a, axis=-1):
    """PyTorch gate order (i, f, g, o) -> kernel order (i, f, o, g)."""
    i, f, g, o = jnp.split(a, 4, axis=axis)
    return jnp.concatenate([i, f, o, g], axis=axis)


def bilstm_classifier_pallas(last_hidden_state, params):
    """last_hidden_state: [B, T, H] float32 -> logits [B, NUM_CLASSES]."""
    B, T, H = last_hidden_state.shape
    Hl = params["w_hh_f"].shape[0]
    C = params["w_fc"].shape[1]
    Cp = OUT_PAD

    BT = _pick_batch_tile(B)
    Bp = pl.cdiv(B, BT) * BT

    x = last_hidden_state
    if Bp != B:
        x = jnp.pad(x, ((0, Bp - B), (0, 0), (0, 0)))
    # Time-major row order within each batch tile so the per-step gate read in
    # the kernel is a contiguous [BT, 8*Hl] slab (no stride-T sublane gather on
    # the serial recurrence). One-time reorder, off the critical path.
    x_tm = (
        x.reshape(Bp // BT, BT, T, H)
         .transpose(0, 2, 1, 3)
         .reshape(Bp * T, H)
         .astype(jnp.bfloat16)                       # bf16 MXU inputs
    )

    # Gate columns permuted offline to (i, f, o, g).
    w_ih = jnp.concatenate(
        [_reorder_gates(params["w_ih_f"]), _reorder_gates(params["w_ih_b"])],
        axis=1).astype(jnp.bfloat16)                                    # [H, 8*Hl]
    b_ih = jnp.concatenate(
        [_reorder_gates(params["b_f"]), _reorder_gates(params["b_b"])],
        axis=1)                                                         # [1, 8*Hl]
    w_hh = _reorder_gates(params["w_hh_f"]).astype(jnp.bfloat16)        # [Hl, 4*Hl]
    w_fc = jnp.zeros((2 * Hl, Cp), jnp.bfloat16).at[:, :C].set(
        params["w_fc"].astype(jnp.bfloat16))                            # [2*Hl, Cp]
    b_fc = jnp.zeros((1, Cp), jnp.float32).at[:, :C].set(params["b_fc"])  # [1, Cp]

    flops = (2 * Bp * T * H * 8 * Hl          # hoisted input projection
             + 2 * T * Bp * Hl * 4 * Hl       # recurrent h @ W_hh
             + 2 * Bp * 2 * Hl * Cp)          # classifier
    transcendentals = Bp * (T + 1) * 5 * Hl
    bytes_accessed = (Bp * T * H * 2 + H * 8 * Hl * 2 + 8 * Hl * 4
                      + Hl * 4 * Hl * 2 + 2 * Hl * Cp * 2 + Cp * 4
                      + Bp * Cp * 4)

    # Explicit VMEM budget (v5e scoped default is only 16 MiB; v7x physical is
    # 64 MiB -- at real Hl/T, cap BT or store gx in bf16 instead of growing it).
    per_step_vmem = (
        2 * (BT * T * H * 2)                          # x tile (double-buffered)
        + 2 * (H * 8 * Hl * 2 + 8 * Hl * 4)           # w_ih + b_ih
        + 2 * (Hl * 4 * Hl * 2)                       # w_hh
        + 2 * (2 * Hl * Cp * 2 + Cp * 4)              # w_fc + b_fc
        + 2 * (BT * Cp * 4)                           # out tile
        + BT * T * 8 * Hl * 4                         # gx scratch (f32)
    )
    vmem_limit = int(min(max(2 * per_step_vmem, 4 << 20), 64 << 20))

    out = pl.pallas_call(
        functools.partial(_bilstm_fc_kernel, seq_len=T),
        out_shape=jax.ShapeDtypeStruct((Bp, Cp), jnp.float32),
        grid_spec=pltpu.PrefetchScalarGridSpec(
            num_scalar_prefetch=0,
            grid=(Bp // BT,),
            in_specs=[
                pl.BlockSpec((BT * T, H), lambda i: (i, 0)),     # x tile (time-major)
                pl.BlockSpec((H, 8 * Hl), lambda i: (0, 0)),     # w_ih (resident)
                pl.BlockSpec((1, 8 * Hl), lambda i: (0, 0)),     # b_ih
                pl.BlockSpec((Hl, 4 * Hl), lambda i: (0, 0)),    # w_hh fwd
                pl.BlockSpec((2 * Hl, Cp), lambda i: (0, 0)),    # w_fc (padded)
                pl.BlockSpec((1, Cp), lambda i: (0, 0)),         # b_fc (padded)
            ],
            out_specs=pl.BlockSpec((BT, Cp), lambda i: (i, 0)),
            scratch_shapes=[pltpu.VMEM((BT * T, 8 * Hl), jnp.float32)],
        ),
        compiler_params=pltpu.CompilerParams(
            dimension_semantics=("parallel",),
            vmem_limit_bytes=vmem_limit),
        cost_estimate=pl.CostEstimate(
            flops=flops, transcendentals=transcendentals,
            bytes_accessed=bytes_accessed),
    )(x_tm, w_ih, b_ih, w_hh, w_fc, b_fc)

    return out[:B, :C]


# ------------------------------ parameter setup -------------------------------
def init_params(key):
    ks = jax.random.split(key, 12)
    Hl, H, C = LSTM_HIDDEN, HIDDEN, NUM_CLASSES
    s = 0.1

    def rnd(k, shape):
        return jax.random.normal(k, shape, jnp.float32) * s

    # PyTorch nn.LSTM stores weight_ih_l0 as [4*Hl, H]; we keep transposed form.
    params = {
        "w_ih_f": rnd(ks[0], (H, 4 * Hl)),
        "w_hh_f": rnd(ks[1], (Hl, 4 * Hl)),
        "b_f": rnd(ks[2], (1, 4 * Hl)) + rnd(ks[3], (1, 4 * Hl)),   # b_ih + b_hh
        "w_ih_b": rnd(ks[4], (H, 4 * Hl)),
        "w_hh_b": rnd(ks[5], (Hl, 4 * Hl)),
        "b_b": rnd(ks[6], (1, 4 * Hl)) + rnd(ks[7], (1, 4 * Hl)),
        "w_fc": rnd(ks[8], (2 * Hl, C)),
        "b_fc": rnd(ks[9], (1, C)),
        # stand-in "BERT" embedding tables
        "tok_emb": rnd(ks[10], (VOCAB, H)),
        "type_emb": rnd(ks[11], (2, H)),
    }
    return params


def fake_bert_encoder(params, input_ids, attention_mask, token_type_ids):
    # TODO(synk): pretrained 'bert-base-chinese' encoder has no clean in-script
    # Pallas equivalent; using a deterministic embedding stand-in for
    # last_hidden_state.
    h = params["tok_emb"][input_ids] + params["type_emb"][token_type_ids]
    return h * attention_mask[..., None].astype(jnp.float32)     # [B, T, H]


# ------------------------------ pure-JAX reference -----------------------------
def reference_forward(last_hidden_state, params):
    """Full bidirectional LSTM (f32) + fc, faithful to the PyTorch module."""
    B, T, H = last_hidden_state.shape
    Hl = params["w_hh_f"].shape[0]

    def cell(x_t, h, c, w_ih, w_hh, b):
        gates = x_t @ w_ih + h @ w_hh + b
        i = jax.nn.sigmoid(gates[:, 0 * Hl:1 * Hl])
        f = jax.nn.sigmoid(gates[:, 1 * Hl:2 * Hl])
        g = jnp.tanh(gates[:, 2 * Hl:3 * Hl])
        o = jax.nn.sigmoid(gates[:, 3 * Hl:4 * Hl])
        c = f * c + i * g
        return o * jnp.tanh(c), c

    h = jnp.zeros((B, Hl)); c = jnp.zeros((B, Hl))
    fwd_last = None
    for t in range(T):
        h, c = cell(last_hidden_state[:, t, :], h, c,
                    params["w_ih_f"], params["w_hh_f"], params["b_f"])
        fwd_last = h

    hb = jnp.zeros((B, Hl)); cb = jnp.zeros((B, Hl))
    bwd_out = [None] * T
    for t in reversed(range(T)):
        hb, cb = cell(last_hidden_state[:, t, :], hb, cb,
                      params["w_ih_b"], params["w_hh_b"], params["b_b"])
        bwd_out[t] = hb

    feat = jnp.concatenate([fwd_last, bwd_out[T - 1]], axis=-1)   # lstm_out[:, -1, :]
    return feat @ params["w_fc"] + params["b_fc"]


# ----------------------------------- main --------------------------------------
if __name__ == "__main__":
    key = jax.random.PRNGKey(0)
    k_param, k_ids, k_type = jax.random.split(key, 3)

    params = init_params(k_param)

    input_ids = jax.random.randint(k_ids, (BATCH, SEQ), 0, VOCAB, jnp.int32)
    attention_mask = jnp.ones((BATCH, SEQ), jnp.int32)
    token_type_ids = jax.random.randint(k_type, (BATCH, SEQ), 0, 2, jnp.int32)

    last_hidden_state = fake_bert_encoder(
        params, input_ids, attention_mask, token_type_ids)       # [B, T, H]

    logits = jax.jit(bilstm_classifier_pallas)(last_hidden_state, params)
    logits = jax.block_until_ready(logits)

    ref = reference_forward(last_hidden_state, params)
    assert logits.shape == (BATCH, NUM_CLASSES)
    # bf16 MXU inputs vs f32 reference -> slightly looser tolerance.
    assert jnp.allclose(logits, ref, atol=2e-2, rtol=2e-2), (
        float(jnp.max(jnp.abs(logits - ref))))

    print("KERNEL_OK")
</pallas_src>

<mosaic_0001>
module attributes {stable_mosaic.version = 11 : i64} {
  func.func @_bilstm_fc_kernel(%arg0: i32, %arg1: memref<64x64xbf16, #tpu.memory_space<vmem>>, %arg2: memref<64x256xbf16, #tpu.memory_space<vmem>>, %arg3: memref<1x256xf32, #tpu.memory_space<vmem>>, %arg4: memref<32x128xbf16, #tpu.memory_space<vmem>>, %arg5: memref<64x128xbf16, #tpu.memory_space<vmem>>, %arg6: memref<1x128xf32, #tpu.memory_space<vmem>>, %arg7: memref<8x128xf32, #tpu.memory_space<vmem>>, %arg8: memref<64x256xf32, #tpu.memory_space<vmem>>) attributes {dimension_semantics = [#tpu.dimension_semantics<parallel>], iteration_bounds = array<i64: 1>, scalar_prefetch = 0 : i64, scratch_operands = 1 : i64, tpu.core_type = #tpu.core_type<tc>, window_params = [{transform_indices = @transform_0, window_bounds = array<i64: 64, 64>}, {pipeline_mode = #tpu.pipeline_mode<synchronous>, transform_indices = @transform_1, window_bounds = array<i64: 64, 256>}, {pipeline_mode = #tpu.pipeline_mode<synchronous>, transform_indices = @transform_2, window_bounds = array<i64: 1, 256>}, {pipeline_mode = #tpu.pipeline_mode<synchronous>, transform_indices = @transform_3, window_bounds = array<i64: 32, 128>}, {pipeline_mode = #tpu.pipeline_mode<synchronous>, transform_indices = @transform_4, window_bounds = array<i64: 64, 128>}, {pipeline_mode = #tpu.pipeline_mode<synchronous>, transform_indices = @transform_5, window_bounds = array<i64: 1, 128>}, {transform_indices = @transform_6, window_bounds = array<i64: 8, 128>}]} {
    %c0 = arith.constant 0 : index
    %c0_0 = arith.constant 0 : index
    %0 = vector.load %arg1[%c0, %c0_0] : memref<64x64xbf16, #tpu.memory_space<vmem>>, vector<64x64xbf16>
    %c0_1 = arith.constant 0 : index
    %c0_2 = arith.constant 0 : index
    %1 = vector.load %arg2[%c0_1, %c0_2] : memref<64x256xbf16, #tpu.memory_space<vmem>>, vector<64x256xbf16>
    %cst = arith.constant dense<0.000000e+00> : vector<64x256xf32>
    %2 = tpu.matmul %0, %1, %cst {dimension_numbers = #tpu.dot_dimension_numbers<[1], [0], [0], [1], [0, 0, 1, 1], [], []>} : vector<64x64xbf16>, vector<64x256xbf16>, vector<64x256xf32> -> vector<64x256xf32>
    %c0_3 = arith.constant 0 : index
    %c0_4 = arith.constant 0 : index
    %3 = vector.load %arg3[%c0_3, %c0_4] : memref<1x256xf32, #tpu.memory_space<vmem>>, vector<1x256xf32>
    %4 = vector.broadcast %3 : vector<1x256xf32> to vector<64x256xf32>
    %5 = arith.addf %2, %4 : vector<64x256xf32>
    %c0_5 = arith.constant 0 : index
    %c0_6 = arith.constant 0 : index
    %6 = vector.load %arg8[%c0_5, %c0_6] : memref<64x256xf32, #tpu.memory_space<vmem>>, vector<64x256xf32>
    tpu.vector_store %arg8[%c0_5, %c0_6], %5 {strides = array<i32>} : memref<64x256xf32, #tpu.memory_space<vmem>>, vector<64x256xf32>,
    %c0_7 = arith.constant 0 : index
    %c0_8 = arith.constant 0 : index
    %7 = vector.load %arg4[%c0_7, %c0_8] : memref<32x128xbf16, #tpu.memory_space<vmem>>, vector<32x128xbf16>
    %cst_9 = arith.constant 0.000000e+00 : f32
    %8 = vector.broadcast %cst_9 : f32 to vector<8x32xf32>
    %c56 = arith.constant 56 : index
    %c0_10 = arith.constant 0 : index
    %9 = vector.load %arg8[%c56, %c0_10] : memref<64x256xf32, #tpu.memory_space<vmem>>, vector<8x256xf32>
    %10 = vector.extract_strided_slice %9 {offsets = [0, 128], sizes = [8, 128], strides = [1, 1]} : vector<8x256xf32> to vector<8x128xf32>
    %11 = vector.extract_strided_slice %10 {offsets = [0, 0], sizes = [8, 96], strides = [1, 1]} : vector<8x128xf32> to vector<8x96xf32>
    %12 = arith.negf %11 : vector<8x96xf32>
    %13 = math.exp %12 : vector<8x96xf32>
    %cst_11 = arith.constant 1.000000e+00 : f32
    %14 = vector.broadcast %cst_11 : f32 to vector<8x96xf32>
    %15 = arith.addf %14, %13 : vector<8x96xf32>
    %16 = arith.divf %14, %15 : vector<8x96xf32>
    %17 = vector.extract_strided_slice %10 {offsets = [0, 96], sizes = [8, 32], strides = [1, 1]} : vector<8x128xf32> to vector<8x32xf32>
    %18 = math.tanh %17 : vector<8x32xf32>
    %19 = vector.extract_strided_slice %16 {offsets = [0, 32], sizes = [8, 32], strides = [1, 1]} : vector<8x96xf32> to vector<8x32xf32>
    %20 = arith.mulf %19, %8 : vector<8x32xf32>
    %21 = vector.extract_strided_slice %16 {offsets = [0, 0], sizes = [8, 32], strides = [1, 1]} : vector<8x96xf32> to vector<8x32xf32>
    %22 = arith.mulf %21, %18 : vector<8x32xf32>
    %23 = arith.addf %20, %22 : vector<8x32xf32>
    %24 = vector.extract_strided_slice %16 {offsets = [0, 64], sizes = [8, 32], strides = [1, 1]} : vector<8x96xf32> to vector<8x32xf32>
    %25 = math.tanh %23 : vector<8x32xf32>
    %26 = arith.mulf %24, %25 : vector<8x32xf32>
    %27 = arith.truncf %26 : vector<8x32xf32> to vector<8x32xbf16>
    %c32 = arith.constant 32 : index
    %c0_12 = arith.constant 0 : index
    %28 = vector.load %arg5[%c32, %c0_12] : memref<64x128xbf16, #tpu.memory_space<vmem>>, vector<32x128xbf16>
    %cst_13 = arith.constant dense<0.000000e+00> : vector<8x128xf32>
    %29 = tpu.matmul %27, %28, %cst_13 {dimension_numbers = #tpu.dot_dimension_numbers<[1], [0], [0], [1], [0, 0, 1, 1], [], []>} : vector<8x32xbf16>, vector<32x128xbf16>, vector<8x128xf32> -> vector<8x128xf32>
    %c0_14 = arith.constant 0 : index
    %c0_15 = arith.constant 0 : index
    %30 = vector.load %arg6[%c0_14, %c0_15] : memref<1x128xf32, #tpu.memory_space<vmem>>, vector<1x128xf32>
    %31 = vector.broadcast %30 : vector<1x128xf32> to vector<8x128xf32>
    %32 = arith.addf %29, %31 : vector<8x128xf32>
    %c0_16 = arith.constant 0 : index
    %c0_17 = arith.constant 0 : index
    %33 = vector.load %arg8[%c0_16, %c0_17] : memref<64x256xf32, #tpu.memory_space<vmem>>, vector<8x256xf32>
    %34 = arith.truncf %8 : vector<8x32xf32> to vector<8x32xbf16>
    %cst_18 = arith.constant dense<0.000000e+00> : vector<8x128xf32>
    %35 = tpu.matmul %34, %7, %cst_18 {dimension_numbers = #tpu.dot_dimension_numbers<[1], [0], [0], [1], [0, 0, 1, 1], [], []>} : vector<8x32xbf16>, vector<32x128xbf16>, vector<8x128xf32> -> vector<8x128xf32>
    %36 = vector.extract_strided_slice %33 {offsets = [0, 0], sizes = [8, 128], strides = [1, 1]} : vector<8x256xf32> to vector<8x128xf32>
    %37 = arith.addf %36, %35 : vector<8x128xf32>
    %38 = vector.extract_strided_slice %37 {offsets = [0, 0], sizes = [8, 96], strides = [1, 1]} : vector<8x128xf32> to vector<8x96xf32>
    %39 = arith.negf %38 : vector<8x96xf32>
    %40 = math.exp %39 : vector<8x96xf32>
    %cst_19 = arith.constant 1.000000e+00 : f32
    %41 = vector.broadcast %cst_19 : f32 to vector<8x96xf32>
    %42 = arith.addf %41, %40 : vector<8x96xf32>
    %43 = arith.divf %41, %42 : vector<8x96xf32>
    %44 = vector.extract_strided_slice %37 {offsets = [0, 96], sizes = [8, 32], strides = [1, 1]} : vector<8x128xf32> to vector<8x32xf32>
    %45 = math.tanh %44 : vector<8x32xf32>
    %46 = vector.extract_strided_slice %43 {offsets = [0, 32], sizes = [8, 32], strides = [1, 1]} : vector<8x96xf32> to vector<8x32xf32>
    %47 = arith.mulf %46, %8 : vector<8x32xf32>
    %48 = vector.extract_strided_slice %43 {offsets = [0, 0], sizes = [8, 32], strides = [1, 1]} : vector<8x96xf32> to vector<8x32xf32>
    %49 = arith.mulf %48, %45 : vector<8x32xf32>
    %50 = arith.addf %47, %49 : vector<8x32xf32>
    %51 = vector.extract_strided_slice %43 {offsets = [0, 64], sizes = [8, 32], strides = [1, 1]} : vector<8x96xf32> to vector<8x32xf32>
    %52 = math.tanh %50 : vector<8x32xf32>
    %53 = arith.mulf %51, %52 : vector<8x32xf32>
    %c8 = arith.constant 8 : index
    %c0_20 = arith.constant 0 : index
    %54 = vector.load %arg8[%c8, %c0_20] : memref<64x256xf32, #tpu.memory_space<vmem>>, vector<8x256xf32>
    %55 = arith.truncf %53 : vector<8x32xf32> to vector<8x32xbf16>
    %cst_21 = arith.constant dense<0.000000e+00> : vector<8x128xf32>
    %56 = tpu.matmul %55, %7, %cst_21 {dimension_numbers = #tpu.dot_dimension_numbers<[1], [0], [0], [1], [0, 0, 1, 1], [], []>} : vector<8x32xbf16>, vector<32x128xbf16>, vector<8x128xf32> -> vector<8x128xf32>
    %57 = vector.extract_strided_slice %54 {offsets = [0, 0], sizes = [8, 128], strides = [1, 1]} : vector<8x256xf32> to vector<8x128xf32>
    %58 = arith.addf %57, %56 : vector<8x128xf32>
    %59 = vector.extract_strided_slice %58 {offsets = [0, 0], sizes = [8, 96], strides = [1, 1]} : vector<8x128xf32> to vector<8x96xf32>
    %60 = arith.negf %59 : vector<8x96xf32>
    %61 = math.exp %60 : vector<8x96xf32>
    %cst_22 = arith.constant 1.000000e+00 : f32
    %62 = vector.broadcast %cst_22 : f32 to vector<8x96xf32>
    %63 = arith.addf %62, %61 : vector<8x96xf32>
    %64 = arith.divf %62, %63 : vector<8x96xf32>
    %65 = vector.extract_strided_slice %58 {offsets = [0, 96], sizes = [8, 32], strides = [1, 1]} : vector<8x128xf32> to vector<8x32xf32>
    %66 = math.tanh %65 : vector<8x32xf32>
    %67 = vector.extract_strided_slice %64 {offsets = [0, 32], sizes = [8, 32], strides = [1, 1]} : vector<8x96xf32> to vector<8x32xf32>
    %68 = arith.mulf %67, %50 : vector<8x32xf32>
    %69 = vector.extract_strided_slice %64 {offsets = [0, 0], sizes = [8, 32], strides = [1, 1]} : vector<8x96xf32> to vector<8x32xf32>
    %70 = arith.mulf %69, %66 : vector<8x32xf32>
    %71 = arith.addf %68, %70 : vector<8x32xf32>
    %72 = vector.extract_strided_slice %64 {offsets = [0, 64], sizes = [8, 32], strides = [1, 1]} : vector<8x96xf32> to vector<8x32xf32>
    %73 = math.tanh %71 : vector<8x32xf32>
    %74 = arith.mulf %72, %73 : vector<8x32xf32>
    %c16 = arith.constant 16 : index
    %c0_23 = arith.constant 0 : index
    %75 = vector.load %arg8[%c16, %c0_23] : memref<64x256xf32, #tpu.memory_space<vmem>>, vector<8x256xf32>
    %76 = arith.truncf %74 : vector<8x32xf32> to vector<8x32xbf16>
    %cst_24 = arith.constant dense<0.000000e+00> : vector<8x128xf32>
    %77 = tpu.matmul %76, %7, %cst_24 {dimension_numbers = #tpu.dot_dimension_numbers<[1], [0], [0], [1], [0, 0, 1, 1], [], []>} : vector<8x32xbf16>, vector<32x128xbf16>, vector<8x128xf32> -> vector<8x128xf32>
    %78 = vector.extract_strided_slice %75 {offsets = [0, 0], sizes = [8, 128], strides = [1, 1]} : vector<8x256xf32> to vector<8x128xf32>
    %79 = arith.addf %78, %77 : vector<8x128xf32>
    %80 = vector.extract_strided_slice %79 {offsets = [0, 0], sizes = [8, 96], strides = [1, 1]} : vector<8x128xf32> to vector<8x96xf32>
    %81 = arith.negf %80 : vector<8x96xf32>
    %82 = math.exp %81 : vector<8x96xf32>
    %cst_25 = arith.constant 1.000000e+00 : f32
    %83 = vector.broadcast %cst_25 : f32 to vector<8x96xf32>
    %84 = arith.addf %83, %82 : vector<8x96xf32>
    %85 = arith.divf %83, %84 : vector<8x96xf32>
    %86 = vector.extract_strided_slice %79 {offsets = [0, 96], sizes = [8, 32], strides = [1, 1]} : vector<8x128xf32> to vector<8x32xf32>
    %87 = math.tanh %86 : vector<8x32xf32>
    %88 = vector.extract_strided_slice %85 {offsets = [0, 32], sizes = [8, 32], strides = [1, 1]} : vector<8x96xf32> to vector<8x32xf32>
    %89 = arith.mulf %88, %71 : vector<8x32xf32>
    %90 = vector.extract_strided_slice %85 {offsets = [0, 0], sizes = [8, 32], strides = [1, 1]} : vector<8x96xf32> to vector<8x32xf32>
    %91 = arith.mulf %90, %87 : vector<8x32xf32>
    %92 = arith.addf %89, %91 : vector<8x32xf32>
    %93 = vector.extract_strided_slice %85 {offsets = [0, 64], sizes = [8, 32], strides = [1, 1]} : vector<8x96xf32> to vector<8x32xf32>
    %94 = math.tanh %92 : vector<8x32xf32>
    %95 = arith.mulf %93, %94 : vector<8x32xf32>
    %c24 = arith.constant 24 : index
    %c0_26 = arith.constant 0 : index
    %96 = vector.load %arg8[%c24, %c0_26] : memref<64x256xf32, #tpu.memory_space<vmem>>, vector<8x256xf32>
    %97 = arith.truncf %95 : vector<8x32xf32> to vector<8x32xbf16>
    %cst_27 = arith.constant dense<0.000000e+00> : vector<8x128xf32>
    %98 = tpu.matmul %97, %7, %cst_27 {dimension_numbers = #tpu.dot_dimension_numbers<[1], [0], [0], [1], [0, 0, 1, 1], [], []>} : vector<8x32xbf16>, vector<32x128xbf16>, vector<8x128xf32> -> vector<8x128xf32>
    %99 = vector.extract_strided_slice %96 {offsets = [0, 0], sizes = [8, 128], strides = [1, 1]} : vector<8x256xf32> to vector<8x128xf32>
    %100 = arith.addf %99, %98 : vector<8x128xf32>
    %101 = vector.extract_strided_slice %100 {offsets = [0, 0], sizes = [8, 96], strides = [1, 1]} : vector<8x128xf32> to vector<8x96xf32>
    %102 = arith.negf %101 : vector<8x96xf32>
    %103 = math.exp %102 : vector<8x96xf32>
    %cst_28 = arith.constant 1.000000e+00 : f32
    %104 = vector.broadcast %cst_28 : f32 to vector<8x96xf32>
    %105 = arith.addf %104, %103 : vector<8x96xf32>
    %106 = arith.divf %104, %105 : vector<8x96xf32>
    %107 = vector.extract_strided_slice %100 {offsets = [0, 96], sizes = [8, 32], strides = [1, 1]} : vector<8x128xf32> to vector<8x32xf32>
    %108 = math.tanh %107 : vector<8x32xf32>
    %109 = vector.extract_strided_slice %106 {offsets = [0, 32], sizes = [8, 32], strides = [1, 1]} : vector<8x96xf32> to vector<8x32xf32>
    %110 = arith.mulf %109, %92 : vector<8x32xf32>
    %111 = vector.extract_strided_slice %106 {offsets = [0, 0], sizes = [8, 32], strides = [1, 1]} : vector<8x96xf32> to vector<8x32xf32>
    %112 = arith.mulf %111, %108 : vector<8x32xf32>
    %113 = arith.addf %110, %112 : vector<8x32xf32>
    %114 = vector.extract_strided_slice %106 {offsets = [0, 64], sizes = [8, 32], strides = [1, 1]} : vector<8x96xf32> to vector<8x32xf32>
    %115 = math.tanh %113 : vector<8x32xf32>
    %116 = arith.mulf %114, %115 : vector<8x32xf32>
    %c32_29 = arith.constant 32 : index
    %c0_30 = arith.constant 0 : index
    %117 = vector.load %arg8[%c32_29, %c0_30] : memref<64x256xf32, #tpu.memory_space<vmem>>, vector<8x256xf32>
    %118 = arith.truncf %116 : vector<8x32xf32> to vector<8x32xbf16>
    %cst_31 = arith.constant dense<0.000000e+00> : vector<8x128xf32>
    %119 = tpu.matmul %118, %7, %cst_31 {dimension_numbers = #tpu.dot_dimension_numbers<[1], [0], [0], [1], [0, 0, 1, 1], [], []>} : vector<8x32xbf16>, vector<32x128xbf16>, vector<8x128xf32> -> vector<8x128xf32>
    %120 = vector.extract_strided_slice %117 {offsets = [0, 0], sizes = [8, 128], strides = [1, 1]} : vector<8x256xf32> to vector<8x128xf32>
    %121 = arith.addf %120, %119 : vector<8x128xf32>
    %122 = vector.extract_strided_slice %121 {offsets = [0, 0], sizes = [8, 96], strides = [1, 1]} : vector<8x128xf32> to vector<8x96xf32>
    %123 = arith.negf %122 : vector<8x96xf32>
    %124 = math.exp %123 : vector<8x96xf32>
    %cst_32 = arith.constant 1.000000e+00 : f32
    %125 = vector.broadcast %cst_32 : f32 to vector<8x96xf32>
    %126 = arith.addf %125, %124 : vector<8x96xf32>
    %127 = arith.divf %125, %126 : vector<8x96xf32>
    %128 = vector.extract_strided_slice %121 {offsets = [0, 96], sizes = [8, 32], strides = [1, 1]} : vector<8x128xf32> to vector<8x32xf32>
    %129 = math.tanh %128 : vector<8x32xf32>
    %130 = vector.extract_strided_slice %127 {offsets = [0, 32], sizes = [8, 32], strides = [1, 1]} : vector<8x96xf32> to vector<8x32xf32>
    %131 = arith.mulf %130, %113 : vector<8x32xf32>
    %132 = vector.extract_strided_slice %127 {offsets = [0, 0], sizes = [8, 32], strides = [1, 1]} : vector<8x96xf32> to vector<8x32xf32>
    %133 = arith.mulf %132, %129 : vector<8x32xf32>
    %134 = arith.addf %131, %133 : vector<8x32xf32>
    %135 = vector.extract_strided_slice %127 {offsets = [0, 64], sizes = [8, 32], strides = [1, 1]} : vector<8x96xf32> to vector<8x32xf32>
    %136 = math.tanh %134 : vector<8x32xf32>
    %137 = arith.mulf %135, %136 : vector<8x32xf32>
    %c40 = arith.constant 40 : index
    %c0_33 = arith.constant 0 : index
    %138 = vector.load %arg8[%c40, %c0_33] : memref<64x256xf32, #tpu.memory_space<vmem>>, vector<8x256xf32>
    %139 = arith.truncf %137 : vector<8x32xf32> to vector<8x32xbf16>
    %cst_34 = arith.constant dense<0.000000e+00> : vector<8x128xf32>
    %140 = tpu.matmul %139, %7, %cst_34 {dimension_numbers = #tpu.dot_dimension_numbers<[1], [0], [0], [1], [0, 0, 1, 1], [], []>} : vector<8x32xbf16>, vector<32x128xbf16>, vector<8x128xf32> -> vector<8x128xf32>
    %141 = vector.extract_strided_slice %138 {offsets = [0, 0], sizes = [8, 128], strides = [1, 1]} : vector<8x256xf32> to vector<8x128xf32>
    %142 = arith.addf %141, %140 : vector<8x128xf32>
    %143 = vector.extract_strided_slice %142 {offsets = [0, 0], sizes = [8, 96], strides = [1, 1]} : vector<8x128xf32> to vector<8x96xf32>
    %144 = arith.negf %143 : vector<8x96xf32>
    %145 = math.exp %144 : vector<8x96xf32>
    %cst_35 = arith.constant 1.000000e+00 : f32
    %146 = vector.broadcast %cst_35 : f32 to vector<8x96xf32>
    %147 = arith.addf %146, %145 : vector<8x96xf32>
    %148 = arith.divf %146, %147 : vector<8x96xf32>
    %149 = vector.extract_strided_slice %142 {offsets = [0, 96], sizes = [8, 32], strides = [1, 1]} : vector<8x128xf32> to vector<8x32xf32>
    %150 = math.tanh %149 : vector<8x32xf32>
    %151 = vector.extract_strided_slice %148 {offsets = [0, 32], sizes = [8, 32], strides = [1, 1]} : vector<8x96xf32> to vector<8x32xf32>
    %152 = arith.mulf %151, %134 : vector<8x32xf32>
    %153 = vector.extract_strided_slice %148 {offsets = [0, 0], sizes = [8, 32], strides = [1, 1]} : vector<8x96xf32> to vector<8x32xf32>
    %154 = arith.mulf %153, %150 : vector<8x32xf32>
    %155 = arith.addf %152, %154 : vector<8x32xf32>
    %156 = vector.extract_strided_slice %148 {offsets = [0, 64], sizes = [8, 32], strides = [1, 1]} : vector<8x96xf32> to vector<8x32xf32>
    %157 = math.tanh %155 : vector<8x32xf32>
    %158 = arith.mulf %156, %157 : vector<8x32xf32>
    %c48 = arith.constant 48 : index
    %c0_36 = arith.constant 0 : index
    %159 = vector.load %arg8[%c48, %c0_36] : memref<64x256xf32, #tpu.memory_space<vmem>>, vector<8x256xf32>
    %160 = arith.truncf %158 : vector<8x32xf32> to vector<8x32xbf16>
    %cst_37 = arith.constant dense<0.000000e+00> : vector<8x128xf32>
    %161 = tpu.matmul %160, %7, %cst_37 {dimension_numbers = #tpu.dot_dimension_numbers<[1], [0], [0], [1], [0, 0, 1, 1], [], []>} : vector<8x32xbf16>, vector<32x128xbf16>, vector<8x128xf32> -> vector<8x128xf32>
    %162 = vector.extract_strided_slice %159 {offsets = [0, 0], sizes = [8, 128], strides = [1, 1]} : vector<8x256xf32> to vector<8x128xf32>
    %163 = arith.addf %162, %161 : vector<8x128xf32>
    %164 = vector.extract_strided_slice %163 {offsets = [0, 0], sizes = [8, 96], strides = [1, 1]} : vector<8x128xf32> to vector<8x96xf32>
    %165 = arith.negf %164 : vector<8x96xf32>
    %166 = math.exp %165 : vector<8x96xf32>
    %cst_38 = arith.constant 1.000000e+00 : f32
    %167 = vector.broadcast %cst_38 : f32 to vector<8x96xf32>
    %168 = arith.addf %167, %166 : vector<8x96xf32>
    %169 = arith.divf %167, %168 : vector<8x96xf32>
    %170 = vector.extract_strided_slice %163 {offsets = [0, 96], sizes = [8, 32], strides = [1, 1]} : vector<8x128xf32> to vector<8x32xf32>
    %171 = math.tanh %170 : vector<8x32xf32>
    %172 = vector.extract_strided_slice %169 {offsets = [0, 32], sizes = [8, 32], strides = [1, 1]} : vector<8x96xf32> to vector<8x32xf32>
    %173 = arith.mulf %172, %155 : vector<8x32xf32>
    %174 = vector.extract_strided_slice %169 {offsets = [0, 0], sizes = [8, 32], strides = [1, 1]} : vector<8x96xf32> to vector<8x32xf32>
    %175 = arith.mulf %174, %171 : vector<8x32xf32>
    %176 = arith.addf %173, %175 : vector<8x32xf32>
    %177 = vector.extract_strided_slice %169 {offsets = [0, 64], sizes = [8, 32], strides = [1, 1]} : vector<8x96xf32> to vector<8x32xf32>
    %178 = math.tanh %176 : vector<8x32xf32>
    %179 = arith.mulf %177, %178 : vector<8x32xf32>
    %c56_39 = arith.constant 56 : index
    %c0_40 = arith.constant 0 : index
    %180 = vector.load %arg8[%c56_39, %c0_40] : memref<64x256xf32, #tpu.memory_space<vmem>>, vector<8x256xf32>
    %181 = arith.truncf %179 : vector<8x32xf32> to vector<8x32xbf16>
    %cst_41 = arith.constant dense<0.000000e+00> : vector<8x128xf32>
    %182 = tpu.matmul %181, %7, %cst_41 {dimension_numbers = #tpu.dot_dimension_numbers<[1], [0], [0], [1], [0, 0, 1, 1], [], []>} : vector<8x32xbf16>, vector<32x128xbf16>, vector<8x128xf32> -> vector<8x128xf32>
    %183 = vector.extract_strided_slice %180 {offsets = [0, 0], sizes = [8, 128], strides = [1, 1]} : vector<8x256xf32> to vector<8x128xf32>
    %184 = arith.addf %183, %182 : vector<8x128xf32>
    %185 = vector.extract_strided_slice %184 {offsets = [0, 0], sizes = [8, 96], strides = [1, 1]} : vector<8x128xf32> to vector<8x96xf32>
    %186 = arith.negf %185 : vector<8x96xf32>
    %187 = math.exp %186 : vector<8x96xf32>
    %cst_42 = arith.constant 1.000000e+00 : f32
    %188 = vector.broadcast %cst_42 : f32 to vector<8x96xf32>
    %189 = arith.addf %188, %187 : vector<8x96xf32>
    %190 = arith.divf %188, %189 : vector<8x96xf32>
    %191 = vector.extract_strided_slice %184 {offsets = [0, 96], sizes = [8, 32], strides = [1, 1]} : vector<8x128xf32> to vector<8x32xf32>
    %192 = math.tanh %191 : vector<8x32xf32>
    %193 = vector.extract_strided_slice %190 {offsets = [0, 32], sizes = [8, 32], strides = [1, 1]} : vector<8x96xf32> to vector<8x32xf32>
    %194 = arith.mulf %193, %176 : vector<8x32xf32>
    %195 = vector.extract_strided_slice %190 {offsets = [0, 0], sizes = [8, 32], strides = [1, 1]} : vector<8x96xf32> to vector<8x32xf32>
    %196 = arith.mulf %195, %192 : vector<8x32xf32>
    %197 = arith.addf %194, %196 : vector<8x32xf32>
    %198 = vector.extract_strided_slice %190 {offsets = [0, 64], sizes = [8, 32], strides = [1, 1]} : vector<8x96xf32> to vector<8x32xf32>
    %199 = math.tanh %197 : vector<8x32xf32>
    %200 = arith.mulf %198, %199 : vector<8x32xf32>
    %201 = arith.truncf %200 : vector<8x32xf32> to vector<8x32xbf16>
    %c0_43 = arith.constant 0 : index
    %c0_44 = arith.constant 0 : index
    %202 = vector.load %arg5[%c0_43, %c0_44] : memref<64x128xbf16, #tpu.memory_space<vmem>>, vector<32x128xbf16>
    %cst_45 = arith.constant dense<0.000000e+00> : vector<8x128xf32>
    %203 = tpu.matmul %201, %202, %cst_45 {dimension_numbers = #tpu.dot_dimension_numbers<[1], [0], [0], [1], [0, 0, 1, 1], [], []>} : vector<8x32xbf16>, vector<32x128xbf16>, vector<8x128xf32> -> vector<8x128xf32>
    %204 = arith.addf %203, %32 : vector<8x128xf32>
    %c0_46 = arith.constant 0 : index
    %c0_47 = arith.constant 0 : index
    %205 = vector.load %arg7[%c0_46, %c0_47] : memref<8x128xf32, #tpu.memory_space<vmem>>, vector<8x128xf32>
    tpu.vector_store %arg7[%c0_46, %c0_47], %204 {strides = array<i32>} : memref<8x128xf32, #tpu.memory_space<vmem>>, vector<8x128xf32>,
    return
  }
  func.func @transform_0(%arg0: i32) -> (i32, i32) {
    %c0_i32 = arith.constant 0 : i32
    %c0_i32_0 = arith.constant 0 : i32
    return %arg0, %c0_i32 : i32, i32
  }
  func.func @transform_1(%arg0: i32) -> (i32, i32) {
    %c0_i32 = arith.constant 0 : i32
    %c0_i32_0 = arith.constant 0 : i32
    %c0_i32_1 = arith.constant 0 : i32
    return %c0_i32, %c0_i32_0 : i32, i32
  }
  func.func @transform_2(%arg0: i32) -> (i32, i32) {
    %c0_i32 = arith.constant 0 : i32
    %c0_i32_0 = arith.constant 0 : i32
    %c0_i32_1 = arith.constant 0 : i32
    return %c0_i32, %c0_i32_0 : i32, i32
  }
  func.func @transform_3(%arg0: i32) -> (i32, i32) {
    %c0_i32 = arith.constant 0 : i32
    %c0_i32_0 = arith.constant 0 : i32
    %c0_i32_1 = arith.constant 0 : i32
    return %c0_i32, %c0_i32_0 : i32, i32
  }
  func.func @transform_4(%arg0: i32) -> (i32, i32) {
    %c0_i32 = arith.constant 0 : i32
    %c0_i32_0 = arith.constant 0 : i32
    %c0_i32_1 = arith.constant 0 : i32
    return %c0_i32, %c0_i32_0 : i32, i32
  }
  func.func @transform_5(%arg0: i32) -> (i32, i32) {
    %c0_i32 = arith.constant 0 : i32
    %c0_i32_0 = arith.constant 0 : i32
    %c0_i32_1 = arith.constant 0 : i32
    return %c0_i32, %c0_i32_0 : i32, i32
  }
  func.func @transform_6(%arg0: i32) -> (i32, i32) {
    %c0_i32 = arith.constant 0 : i32
    %c0_i32_0 = arith.constant 0 : i32
    return %arg0, %c0_i32 : i32, i32
  }
}

</mosaic_0001>

<bundles_post_ra>
// kernel: bilstm_classifier_pallas.1
= control target key start
LH: loop header
LB: loop body
LE: loop exit
PB: predicated region body
PF: predicated region fallthrough
CT: control target
= control target key end

     0   :  { %v1224_v1 = vmov 0   ;;  %vm112_vm0 = vcmask 523264   ;;  %v42_v13 = vlaneseq  ;;  %v1226_v54 = vmov 0.0   ;;  %s1228_s29 = smov 64   ;;  %s1474_s1 = inlined_call_operand.vmem [shape: bf16[64,256], index: 1, kind: input, shape index: {}]   ;;  %s1475_s0 = inlined_call_operand.vmem [shape: bf16[64,64], index: 0, kind: input, shape index: {}]   ;;  %s1476_s2 = inlined_call_operand.vmem [shape: f32[1,256], index: 2, kind: input, shape index: {}]   ;;  %s1477_s4 = inlined_call_operand.vmem [shape: bf16[64,128], index: 4, kind: input, shape index: {}]   ;;  %s1478_s3 = inlined_call_operand.vmem [shape: bf16[32,128], index: 3, kind: input, shape index: {}]   ;;  %s1479_s5 = inlined_call_operand.vmem [shape: f32[1,128], index: 5, kind: input, shape index: {}]   ;;  %s1480_s6 = inlined_call_operand.vmem [shape: f32[8,128], index: 6, kind: output, shape index: {}]  }
   0x1   :  { %v1130_v0 = vld [vmem:[%s1474_s1 + $0x34] ss:$8 sps:$4 sm:$0xff]   ;;  %157 = vmatprep.mubr.bf16.mxu0 %v1224_v1  ;;  %v1132_v2 = vld [vmem:[%s1474_s1 + $0x30] ss:$8 sps:$4 sm:$0xff]   ;;  %v1133_v3 = vld [vmem:[%s1474_s1 + $0x24] ss:$8 sps:$4 sm:$0xff]   ;;  %1045 = vmatprep.subr.bf16.mxu1 %v1226_v54 }
   0x2   :  { %133 = vmatprep.subr.bf16.mxu0 %v1130_v0  ;;  %v1135_v4 = vld [vmem:[%s1474_s1 + $0x20] ss:$8 sps:$4 sm:$0xff]   ;;  %v1136_v5 = vld [vmem:[%s1474_s1 + $0x14] ss:$8 sps:$4 sm:$0xff]   ;;  %v1138_v6 = vld [vmem:[%s1474_s1 + $0x10] ss:$8 sps:$4 sm:$0xff]  }
   0x3   :  { %134 = vmatpush1.bf16.msra.mxu0 %v1132_v2  ;;  %v1139_v7 = vld [vmem:[%s1474_s1 + $0x4] ss:$8 sps:$4 sm:$0xff]   ;;  %v1141_v8 = vld [vmem:[%s1474_s1] ss:$8 sps:$4 sm:$0xff]   ;;  %v1144_v11 = vld [vmem:[%s1475_s0 + $0x10] sm:$0xff]   ;;  %v43_v14 = vshrl.u32 %v42_v13, 7 }
   0x4   :  { %135 = vmatprep.subr.bf16.mxu0 %v1133_v3  ;;  %v1142_v9 = vld [vmem:[%s1475_s0] sm:$0xff]   ;;  %v1143_v10 = vld [vmem:[%s1475_s0 + $0x8] sm:$0xff]   ;;  %v1145_v12 = vld [vmem:[%s1475_s0 + $0x18] sm:$0xff]   ;;  %s1225_s0 = smov 32   ;;  %vm1227_vm1 = vmmov 0   ;;  %vm271_vm2 = vcmask 261120  }
   0x5   :  { %v44_v15 = vsub.s32 0, %v43_v14  ;;  %v40_v16 = vld [vmem:[%s1476_s2] sm:$0x3]  ;;  %v48_v35 = vsub.s32 1, %v43_v14  ;;  %v1146_v55 = vld [vmem:[%s1477_s4 + $0x18] sm:$0xff]   ;;  %1049 = vmatprep.mubr.msk.bf16.mxu1 %vm1227_vm1, %v1226_v54  ;;  %v1147_v56 = vld [vmem:[%s1477_s4 + $0x10] sm:$0xff]  }
   0x6   :  { %1046 = vmatpush3.bf16.msra.mxu1 %v1146_v55  ;;  %v1352_v58 = vld [vmem:[%s1478_s3 + $0x8] sm:$0xff]   ;;  %v1359_v59 = vld [vmem:[%s1478_s3] sm:$0xff]  }
   0x7   :  { %136 = vmatpush1.bf16.msra.mxu0 %v1135_v4  ;;  %v1309_v19 = vrot.slane %v40_v16, %v44_v15  ;;  %v49_v39 = vrot.slane %v40_v16, %v48_v35  ;;  %1047 = vmatprep.subr.bf16.mxu1 %v1226_v54 }
   0x8   :  { %137 = vmatprep.subr.bf16.mxu0 %v1136_v5 }
   0xa   :  { %1048 = vmatpush3.bf16.msra.mxu1 %v1147_v56 }
   0xb   :  { %138 = vmatpush1.bf16.msra.mxu0 %v1138_v6  ;;  %1053 = vmatprep.subr.bf16.mxu1 %v1226_v54 }
   0xc   :  { %139 = vmatprep.subr.bf16.mxu0 %v1139_v7 }
   0xf   :  { %140 = vmatpush1.bf16.msra.mxu0 %v1141_v8 }
  0x10   :  { %1085 = vmatprep.subr.bf16.mxu0 %v1226_v54 }
  0x12   :  { %986 = vmatmul.mubr.msk.bf16.vlgmr.msra.gmra.mxu0 %vm112_vm0, %v1142_v9 }
  0x13   :  { %167 = vmatprep.mubr.bf16.mxu0 %v1224_v1  ;;  %1086 = vmatpush3.bf16.msra.mxu0 %v1352_v58 }
  0x14   :  { %1087 = vmatprep.subr.bf16.mxu0 %v1226_v54 }
  0x17   :  { %1088 = vmatpush3.bf16.msra.mxu0 %v1359_v59 }
  0x18   :  { %1101 = vmatprep.subr.bf16.mxu0 %v1226_v54 }
  0x1a   :  { %987 = vmatmul.mubr.msk.bf16.gmra.mxu0 %vm112_vm0, %v1143_v10 }
  0x1b   :  { %177 = vmatprep.mubr.bf16.mxu0 %v1224_v1 }
  0x22   :  { %988 = vmatmul.mubr.msk.bf16.gmra.mxu0 %vm112_vm0, %v1144_v11 }
  0x23   :  { %187 = vmatprep.mubr.bf16.mxu0 %v1224_v1 }
  0x2a   :  { %989 = vmatmul.mubr.msk.bf16.gmra.mxu0 %vm112_vm0, %v1145_v12 }
  0x2b   :  { %1089 = vmatprep.mubr.msk.bf16.mxu0 %vm1227_vm1, %v1226_v54 }
  0xd2   :  { %v1307_v17 = vpop.f32.mrf.mxu0 }
  0xd3   :  { %v160_v5 = vadd.f32 %v1307_v17, %v1309_v19 }
  0xd4   :  { %v161_v18 = vpop.f32.mrf.mxu0 }
  0xd6   :  { %v163_v20 = vpop.f32.mrf.mxu0 }
  0xd7   :  { %v1312_v21 = vadd.f32 %v163_v20, %v1309_v19 }
  0xd8   :  { %v165_v22 = vpop.f32.mrf.mxu0 }
  0xda   :  { %v169_v23 = vpop.f32.mrf.mxu0 }
  0xdb   :  { %v1315_v24 = vadd.f32 %v169_v23, %v1309_v19 }
  0xdc   :  { %v171_v25 = vpop.f32.mrf.mxu0 }
  0xde   :  { %v173_v26 = vpop.f32.mrf.mxu0 }
  0xdf   :  { %v1318_v27 = vadd.f32 %v173_v26, %v1309_v19 }
  0xe0   :  { %v175_v28 = vpop.f32.mrf.mxu0 }
  0xe2   :  { %v179_v29 = vpop.f32.mrf.mxu0 }
  0xe3   :  { %v1321_v30 = vadd.f32 %v179_v29, %v1309_v19 }
  0xe4   :  { %v181_v31 = vpop.f32.mrf.mxu0 }
  0xe6   :  { %v183_v32 = vpop.f32.mrf.mxu0 }
  0xe7   :  { %v1324_v33 = vadd.f32 %v183_v32, %v1309_v19 }
  0xe8   :  { %v185_v34 = vpop.f32.mrf.mxu0 }
  0xea   :  { %v189_v36 = vpop.f32.mrf.mxu0 }
  0xeb   :  { %v1327_v37 = vadd.f32 %v189_v36, %v1309_v19 }
  0xec   :  { %v191_v38 = vpop.f32.mrf.mxu0 }
  0xee   :  { %v193_v40 = vpop.f32.mrf.mxu0 }
  0xef   :  { %v1330_v41 = vadd.f32 %v193_v40, %v1309_v19 }
  0xf0   :  { %v195_v42 = vpop.f32.mrf.mxu0 }
  0xf1   :  { %v196_v43 = vadd.f32 %v195_v42, %v49_v39 }
  0xf3   :  { %1152 = vtanh.f32 %v196_v43  ;;  %v990_v45 = vmul.f32 -1.442695, %v196_v43 }
  0xf5   :  { %1154 = vpow2.f32 %v990_v45 }
 0x100   :  { %v1153_v44 = vpop.eup %1152 }
 0x101   :  { %229 = vrot.lane.b32.xlu0 %v1153_v44, %s1225_s0 }
 0x102   :  { %v1155_v46 = vpop.eup %1154 }
 0x103   :  { %v223_v47 = vadd.f32 1.0, %v1155_v46 }
 0x105   :  { %1156 = vrcp.f32 %v223_v47 }
 0x112   :  { %v1157_v48 = vpop.eup %1156 }
 0x113   :  { %v227_v51 = vmul.f32 0.0, %v1157_v48 }
 0x173   :  { %v230_v49 = vpop.permute.xlu0 %229 }
 0x174   :  { %v232_v50 = vmul.f32 %v1157_v48, %v230_v49 }
 0x176   :  { %234 = vrot.lane.b32.xlu0 %v232_v50, %s1225_s0 }
 0x1e8   :  { %v235_v52 = vpop.permute.xlu0 %234 }
 0x1e9   :  { %v237_v53 = vadd.f32 %v235_v52, %v227_v51 }
 0x1eb   :  { %1158 = vtanh.f32 %v237_v53 }
 0x1f8   :  { %v1159_v57 = vpop.eup %1158 }
 0x1f9   :  { %240 = vrot.lane.b32.xlu1 %v1159_v57, %s1225_s0 }
 0x26b   :  { %v241_v60 = vpop.permute.xlu1 %240 }
 0x26c   :  { %v243_v61 = vmul.f32 %v1157_v48, %v241_v60 }
 0x26e   :  { %v244_v62 = vpack.c.bf16 %v243_v61, %v243_v61 }
 0x270   :  { %257 = vrot.lane.b32.xlu1 %v244_v62, %s1228_s29 }
 0x2e2   :  { %v258_v63 = vpop.permute.xlu1 %257 }
 0x2e3   :  { %1050 = vmatmul.mubr.msk.bf16.vlgmr.msra.gmra.mxu1 %vm271_vm2, %v258_v63 }
 0x2e4   :  { %1054 = vmatpush3.bf16.msra.mxu1 %v1352_v58  ;;  %1057 = vmatprep.mubr.msk.bf16.mxu1 %vm1227_vm1, %v1226_v54 }
 0x2e5   :  { %1055 = vmatprep.subr.bf16.mxu1 %v1226_v54 }
 0x2e8   :  { %1056 = vmatpush3.bf16.msra.mxu1 %v1359_v59 }
 0x2e9   :  { %1061 = vmatprep.subr.bf16.mxu1 %v1226_v54 }
 0x2eb   :  { %1058 = vmatmul.mubr.bf16.vlgmr.msra.gmra.mxu1 %v1224_v1 }
 0x2ec   :  { %1062 = vmatpush3.bf16.msra.mxu1 %v1352_v58  ;;  %1065 = vmatprep.mubr.msk.bf16.mxu1 %vm1227_vm1, %v1226_v54 }
 0x2ed   :  { %1063 = vmatprep.subr.bf16.mxu1 %v1226_v54 }
 0x2f0   :  { %1064 = vmatpush3.bf16.msra.mxu1 %v1359_v59 }
 0x2f1   :  { %1069 = vmatprep.subr.bf16.mxu1 %v1226_v54 }
 0x3a3   :  { %v1378_v0 = vpop.f32.mrf.mxu1 }
 0x3a5   :  { %v1051_v2 = vpop.f32.mrf.mxu1 }
 0x3a7   :  { %v312_v3 = vpop.f32.mrf.mxu1 }
 0x3a9   :  { %v1052_v4 = vpop.f32.mrf.mxu1 }
 0x3ab   :  { %v365_v1 = vpop.f32.mrf.mxu1 }
 0x3ac   :  { %v371_v6 = vadd.f32 %v365_v1, %v160_v5 }
 0x3ad   :  { %v1059_v7 = vpop.f32.mrf.mxu1 }
 0x3ae   :  { %1160 = vtanh.f32 %v371_v6  ;;  %v997_v11 = vmul.f32 -1.442695, %v371_v6 }
 0x3af   :  { %v368_v8 = vpop.f32.mrf.mxu1 }
 0x3b0   :  { %1162 = vpow2.f32 %v997_v11 }
 0x3b1   :  { %v1060_v9 = vpop.f32.mrf.mxu1 }
 0x3bb   :  { %v1161_v10 = vpop.eup %1160 }
 0x3bc   :  { %381 = vrot.lane.b32.xlu0 %v1161_v10, %s1225_s0 }
 0x3bd   :  { %v1163_v12 = vpop.eup %1162 }
 0x3be   :  { %v375_v13 = vadd.f32 1.0, %v1163_v12 }
 0x3c0   :  { %1164 = vrcp.f32 %v375_v13 }
 0x3cd   :  { %v1165_v14 = vpop.eup %1164 }
 0x3ce   :  { %v379_v17 = vmul.f32 0.0, %v1165_v14 }
 0x42e   :  { %v382_v15 = vpop.permute.xlu0 %381 }
 0x42f   :  { %v384_v16 = vmul.f32 %v1165_v14, %v382_v15 }
 0x431   :  { %386 = vrot.lane.b32.xlu1 %v384_v16, %s1225_s0 }
 0x4a3   :  { %v387_v18 = vpop.permute.xlu1 %386 }
 0x4a4   :  { %v389_v19 = vadd.f32 %v387_v18, %v379_v17 }
 0x4a6   :  { %1166 = vtanh.f32 %v389_v19 }
 0x4b3   :  { %v1167_v20 = vpop.eup %1166 }
 0x4b4   :  { %392 = vrot.lane.b32.xlu0 %v1167_v20, %s1225_s0 }
 0x526   :  { %v393_v22 = vpop.permute.xlu0 %392 }
 0x527   :  { %v395_v23 = vmul.f32 %v1165_v14, %v393_v22 }
 0x529   :  { %v397_v25 = vpack.c.bf16 %v395_v23, %v395_v23 }
 0x52b   :  { %399 = vrot.lane.b32.xlu1 %v397_v25, %s1228_s29 }
 0x59d   :  { %v400_v26 = vpop.permute.xlu1 %399 }
 0x59e   :  { %1066 = vmatmul.mubr.msk.bf16.vlgmr.msra.gmra.mxu1 %vm271_vm2, %v400_v26 }
 0x59f   :  { %1070 = vmatpush3.bf16.msra.mxu1 %v1352_v58  ;;  %1073 = vmatprep.mubr.msk.bf16.mxu1 %vm1227_vm1, %v1226_v54 }
 0x5a0   :  { %1071 = vmatprep.subr.bf16.mxu1 %v1226_v54 }
 0x5a3   :  { %1072 = vmatpush3.bf16.msra.mxu1 %v1359_v59 }
 0x5a4   :  { %1077 = vmatprep.subr.bf16.mxu1 %v1226_v54 }
 0x65e   :  { %v438_v28 = vpop.f32.mrf.mxu1 }
 0x65f   :  { %v444_v29 = vadd.f32 %v438_v28, %v1312_v21 }
 0x660   :  { %v1067_v31 = vpop.f32.mrf.mxu1 }
 0x661   :  { %1168 = vtanh.f32 %v444_v29  ;;  %v999_v36 = vmul.f32 -1.442695, %v444_v29 }
 0x662   :  { %v441_v32 = vpop.f32.mrf.mxu1 }
 0x663   :  { %1170 = vpow2.f32 %v999_v36 }
 0x664   :  { %v1068_v34 = vpop.f32.mrf.mxu1 }
 0x66e   :  { %v1169_v35 = vpop.eup %1168 }
 0x66f   :  { %454 = vrot.lane.b32.xlu0 %v1169_v35, %s1225_s0 }
 0x670   :  { %v1171_v38 = vpop.eup %1170 }
 0x671   :  { %v448_v39 = vadd.f32 1.0, %v1171_v38 }
 0x673   :  { %1172 = vrcp.f32 %v448_v39 }
 0x680   :  { %v1173_v40 = vpop.eup %1172 }
 0x681   :  { %v452_v44 = vmul.f32 %v1173_v40, %v389_v19 }
 0x6e1   :  { %v455_v42 = vpop.permute.xlu0 %454 }
 0x6e2   :  { %v457_v43 = vmul.f32 %v1173_v40, %v455_v42 }
 0x6e4   :  { %459 = vrot.lane.b32.xlu1 %v457_v43, %s1225_s0 }
 0x756   :  { %v460_v45 = vpop.permute.xlu1 %459 }
 0x757   :  { %v462_v21 = vadd.f32 %v460_v45, %v452_v44 }
 0x759   :  { %1174 = vtanh.f32 %v462_v21 }
 0x766   :  { %v1175_v46 = vpop.eup %1174 }
 0x767   :  { %465 = vrot.lane.b32.xlu0 %v1175_v46, %s1225_s0 }
 0x7d9   :  { %v466_v47 = vpop.permute.xlu0 %465 }
 0x7da   :  { %v468_v48 = vmul.f32 %v1173_v40, %v466_v47 }
 0x7dc   :  { %v470_v49 = vpack.c.bf16 %v468_v48, %v468_v48 }
 0x7de   :  { %472 = vrot.lane.b32.xlu1 %v470_v49, %s1228_s29 }
 0x850   :  { %v473_v50 = vpop.permute.xlu1 %472 }
 0x851   :  { %1074 = vmatmul.mubr.msk.bf16.vlgmr.msra.gmra.mxu1 %vm271_vm2, %v473_v50 }
 0x852   :  { %1078 = vmatpush3.bf16.msra.mxu1 %v1352_v58  ;;  %1081 = vmatprep.mubr.msk.bf16.mxu1 %vm1227_vm1, %v1226_v54 }
 0x853   :  { %1079 = vmatprep.subr.bf16.mxu1 %v1226_v54 }
 0x856   :  { %1080 = vmatpush3.bf16.msra.mxu1 %v1359_v59 }
 0x857   :  { %1093 = vmatprep.subr.bf16.mxu1 %v1226_v54 }
 0x911   :  { %v511_v51 = vpop.f32.mrf.mxu1 }
 0x912   :  { %v517_v52 = vadd.f32 %v511_v51, %v1315_v24 }
 0x913   :  { %v1075_v53 = vpop.f32.mrf.mxu1 }
 0x914   :  { %1176 = vtanh.f32 %v517_v52  ;;  %v1001_v60 = vmul.f32 -1.442695, %v517_v52 }
 0x915   :  { %v514_v55 = vpop.f32.mrf.mxu1 }
 0x916   :  { %1178 = vpow2.f32 %v1001_v60 }
 0x917   :  { %v1076_v56 = vpop.f32.mrf.mxu1 }
 0x921   :  { %v1177_v57 = vpop.eup %1176 }
 0x922   :  { %527 = vrot.lane.b32.xlu0 %v1177_v57, %s1225_s0 }
 0x923   :  { %v1179_v61 = vpop.eup %1178 }
 0x924   :  { %v521_v62 = vadd.f32 1.0, %v1179_v61 }
 0x926   :  { %1180 = vrcp.f32 %v521_v62 }
 0x933   :  { %v1181_v63 = vpop.eup %1180 }
 0x934   :  { %v525_v4 = vmul.f32 %v1181_v63, %v462_v21 }
 0x994   :  { %v528_v2 = vpop.permute.xlu0 %527 }
 0x995   :  { %v530_v3 = vmul.f32 %v1181_v63, %v528_v2 }
 0x997   :  { %532 = vrot.lane.b32.xlu1 %v530_v3, %s1225_s0 }
 0xa09   :  { %v533_v5 = vpop.permute.xlu1 %532 }
 0xa0a   :  { %v535_v24 = vadd.f32 %v533_v5, %v525_v4 }
 0xa0c   :  { %1182 = vtanh.f32 %v535_v24 }
 0xa19   :  { %v1183_v1 = vpop.eup %1182 }
 0xa1a   :  { %538 = vrot.lane.b32.xlu0 %v1183_v1, %s1225_s0 }
 0xa8c   :  { %v539_v6 = vpop.permute.xlu0 %538 }
 0xa8d   :  { %v541_v7 = vmul.f32 %v1181_v63, %v539_v6 }
 0xa8f   :  { %v543_v8 = vpack.c.bf16 %v541_v7, %v541_v7 }
 0xa91   :  { %545 = vrot.lane.b32.xlu1 %v543_v8, %s1228_s29 }
 0xb03   :  { %v546_v9 = vpop.permute.xlu1 %545 }
 0xb04   :  { %1082 = vmatmul.mubr.msk.bf16.vlgmr.msra.gmra.mxu1 %vm271_vm2, %v546_v9 }
 0xb05   :  { %1094 = vmatpush3.bf16.msra.mxu1 %v1352_v58  ;;  %1097 = vmatprep.mubr.msk.bf16.mxu1 %vm1227_vm1, %v1226_v54 }
 0xb06   :  { %1095 = vmatprep.subr.bf16.mxu1 %v1226_v54 }
 0xb09   :  { %1096 = vmatpush3.bf16.msra.mxu1 %v1359_v59 }
 0xb0a   :  { %1109 = vmatprep.subr.bf16.mxu1 %v1226_v54 }
 0xbc4   :  { %v584_v10 = vpop.f32.mrf.mxu1 }
 0xbc5   :  { %v590_v11 = vadd.f32 %v584_v10, %v1318_v27 }
 0xbc6   :  { %v1083_v12 = vpop.f32.mrf.mxu1 }
 0xbc7   :  { %1184 = vtanh.f32 %v590_v11  ;;  %v1003_v16 = vmul.f32 -1.442695, %v590_v11 }
 0xbc8   :  { %v587_v13 = vpop.f32.mrf.mxu1 }
 0xbc9   :  { %1186 = vpow2.f32 %v1003_v16 }
 0xbca   :  { %v1084_v14 = vpop.f32.mrf.mxu1 }
 0xbd4   :  { %v1185_v15 = vpop.eup %1184 }
 0xbd5   :  { %600 = vrot.lane.b32.xlu0 %v1185_v15, %s1225_s0 }
 0xbd6   :  { %v1187_v17 = vpop.eup %1186 }
 0xbd7   :  { %v594_v18 = vadd.f32 1.0, %v1187_v17 }
 0xbd9   :  { %1188 = vrcp.f32 %v594_v18 }
 0xbe6   :  { %v1189_v19 = vpop.eup %1188 }
 0xbe7   :  { %v598_v23 = vmul.f32 %v1189_v19, %v535_v24 }
 0xc47   :  { %v601_v20 = vpop.permute.xlu0 %600 }
 0xc48   :  { %v603_v22 = vmul.f32 %v1189_v19, %v601_v20 }
 0xc4a   :  { %605 = vrot.lane.b32.xlu1 %v603_v22, %s1225_s0 }
 0xcbc   :  { %v606_v25 = vpop.permute.xlu1 %605 }
 0xcbd   :  { %v608_v27 = vadd.f32 %v606_v25, %v598_v23 }
 0xcbf   :  { %1190 = vtanh.f32 %v608_v27 }
 0xccc   :  { %v1191_v26 = vpop.eup %1190 }
 0xccd   :  { %611 = vrot.lane.b32.xlu0 %v1191_v26, %s1225_s0 }
 0xd3f   :  { %v612_v28 = vpop.permute.xlu0 %611 }
 0xd40   :  { %v614_v29 = vmul.f32 %v1189_v19, %v612_v28 }
 0xd42   :  { %v616_v31 = vpack.c.bf16 %v614_v29, %v614_v29 }
 0xd44   :  { %618 = vrot.lane.b32.xlu1 %v616_v31, %s1228_s29 }
 0xdb6   :  { %v619_v32 = vpop.permute.xlu1 %618 }
 0xdb7   :  { %1090 = vmatmul.mubr.msk.bf16.vlgmr.msra.gmra.mxu0 %vm271_vm2, %v619_v32 }
 0xdb8   :  { %1102 = vmatpush3.bf16.msra.mxu0 %v1352_v58  ;;  %1105 = vmatprep.mubr.msk.bf16.mxu0 %vm1227_vm1, %v1226_v54 }
 0xdb9   :  { %1103 = vmatprep.subr.bf16.mxu0 %v1226_v54 }
 0xdbc   :  { %1104 = vmatpush3.bf16.msra.mxu0 %v1359_v59 }
 0xdbd   :  { %1117 = vmatprep.subr.bf16.mxu0 %v1226_v54 }
 0xe77   :  { %v657_v34 = vpop.f32.mrf.mxu0 }
 0xe78   :  { %v663_v35 = vadd.f32 %v657_v34, %v1321_v30 }
 0xe79   :  { %v1091_v36 = vpop.f32.mrf.mxu0 }
 0xe7a   :  { %1192 = vtanh.f32 %v663_v35  ;;  %v1005_v42 = vmul.f32 -1.442695, %v663_v35 }
 0xe7b   :  { %v660_v38 = vpop.f32.mrf.mxu0 }
 0xe7c   :  { %1194 = vpow2.f32 %v1005_v42 }
 0xe7d   :  { %v1092_v39 = vpop.f32.mrf.mxu0 }
 0xe87   :  { %v1193_v40 = vpop.eup %1192 }
 0xe88   :  { %673 = vrot.lane.b32.xlu0 %v1193_v40, %s1225_s0 }
 0xe89   :  { %v1195_v43 = vpop.eup %1194 }
 0xe8a   :  { %v667_v44 = vadd.f32 1.0, %v1195_v43 }
 0xe8c   :  { %1196 = vrcp.f32 %v667_v44 }
 0xe99   :  { %v1197_v45 = vpop.eup %1196 }
 0xe9a   :  { %v671_v47 = vmul.f32 %v1197_v45, %v608_v27 }
 0xefa   :  { %v674_v21 = vpop.permute.xlu0 %673 }
 0xefb   :  { %v676_v46 = vmul.f32 %v1197_v45, %v674_v21 }
 0xefd   :  { %678 = vrot.lane.b32.xlu1 %v676_v46, %s1225_s0 }
 0xf6f   :  { %v679_v48 = vpop.permute.xlu1 %678 }
 0xf70   :  { %v681_v30 = vadd.f32 %v679_v48, %v671_v47  ;;  %v1150_v48 = vld [vmem:[%s1477_s4 + $0x8] sm:$0xff]  }
 0xf72   :  { %1198 = vtanh.f32 %v681_v30 }
 0xf7f   :  { %v1199_v49 = vpop.eup %1198 }
 0xf80   :  { %684 = vrot.lane.b32.xlu0 %v1199_v49, %s1225_s0 }
 0xff2   :  { %v685_v50 = vpop.permute.xlu0 %684 }
 0xff3   :  { %v687_v51 = vmul.f32 %v1197_v45, %v685_v50 }
 0xff5   :  { %v689_v52 = vpack.c.bf16 %v687_v51, %v687_v51 }
 0xff7   :  { %691 = vrot.lane.b32.xlu1 %v689_v52, %s1228_s29 }
0x1069   :  { %v692_v53 = vpop.permute.xlu1 %691 }
0x106a   :  { %1098 = vmatmul.mubr.msk.bf16.vlgmr.msra.gmra.mxu1 %vm271_vm2, %v692_v53 }
0x106b   :  { %1110 = vmatpush3.bf16.msra.mxu1 %v1352_v58  ;;  %1113 = vmatprep.mubr.msk.bf16.mxu1 %vm1227_vm1, %v1226_v54 }
0x106c   :  { %1111 = vmatprep.subr.bf16.mxu1 %v1226_v54 }
0x106f   :  { %1112 = vmatpush3.bf16.msra.mxu1 %v1359_v59 }
0x112a   :  { %v730_v55 = vpop.f32.mrf.mxu1 }
0x112b   :  { %v736_v56 = vadd.f32 %v730_v55, %v1324_v33  ;;  %v991_v55 = vld [vmem:[%s1479_s5] ss:$0 sm:$0xff] }
0x112c   :  { %v1099_v57 = vpop.f32.mrf.mxu1 }
0x112d   :  { %1200 = vtanh.f32 %v736_v56  ;;  %v1007_v63 = vmul.f32 -1.442695, %v736_v56  ;;  %v310_v56 = vadd.f32 %v991_v55, %v1378_v0 }
0x112e   :  { %v733_v60 = vpop.f32.mrf.mxu1 }
0x112f   :  { %1202 = vpow2.f32 %v1007_v63 }
0x1130   :  { %v1100_v61 = vpop.f32.mrf.mxu1 }
0x113a   :  { %v1201_v62 = vpop.eup %1200 }
0x113b   :  { %746 = vrot.lane.b32.xlu0 %v1201_v62, %s1225_s0 }
0x113c   :  { %v1203_v58 = vpop.eup %1202 }
0x113d   :  { %v740_v2 = vadd.f32 1.0, %v1203_v58 }
0x113f   :  { %1204 = vrcp.f32 %v740_v2 }
0x114c   :  { %v1205_v3 = vpop.eup %1204 }
0x114d   :  { %v744_v59 = vmul.f32 %v1205_v3, %v681_v30  ;;  %v1151_v30 = vld [vmem:[%s1477_s4] sm:$0xff]  }
0x11ad   :  { %v747_v4 = vpop.permute.xlu0 %746 }
0x11ae   :  { %v749_v5 = vmul.f32 %v1205_v3, %v747_v4 }
0x11b0   :  { %751 = vrot.lane.b32.xlu1 %v749_v5, %s1225_s0 }
0x1222   :  { %v752_v24 = vpop.permute.xlu1 %751 }
0x1223   :  { %v754_v33 = vadd.f32 %v752_v24, %v744_v59 }
0x1225   :  { %1206 = vtanh.f32 %v754_v33 }
0x1232   :  { %v1207_v1 = vpop.eup %1206 }
0x1233   :  { %757 = vrot.lane.b32.xlu0 %v1207_v1, %s1225_s0 }
0x12a5   :  { %v758_v6 = vpop.permute.xlu0 %757 }
0x12a6   :  { %v760_v7 = vmul.f32 %v1205_v3, %v758_v6 }
0x12a8   :  { %v762_v8 = vpack.c.bf16 %v760_v7, %v760_v7 }
0x12aa   :  { %764 = vrot.lane.b32.xlu1 %v762_v8, %s1228_s29 }
0x131c   :  { %v765_v9 = vpop.permute.xlu1 %764 }
0x131d   :  { %1106 = vmatmul.mubr.msk.bf16.vlgmr.msra.gmra.mxu0 %vm271_vm2, %v765_v9 }
0x131e   :  { %1121 = vmatprep.mubr.msk.bf16.mxu0 %vm1227_vm1, %v1226_v54  ;;  %1118 = vmatpush3.bf16.msra.mxu0 %v1150_v48 }
0x131f   :  { %1119 = vmatprep.subr.bf16.mxu0 %v1226_v54 }
0x1322   :  { %1120 = vmatpush3.bf16.msra.mxu0 %v1151_v30 }
0x13dd   :  { %v803_v10 = vpop.f32.mrf.mxu0 }
0x13de   :  { %v809_v11 = vadd.f32 %v803_v10, %v1327_v37 }
0x13df   :  { %v1107_v12 = vpop.f32.mrf.mxu0 }
0x13e0   :  { %1208 = vtanh.f32 %v809_v11  ;;  %v1009_v16 = vmul.f32 -1.442695, %v809_v11 }
0x13e1   :  { %v806_v13 = vpop.f32.mrf.mxu0 }
0x13e2   :  { %1210 = vpow2.f32 %v1009_v16 }
0x13e3   :  { %v1108_v14 = vpop.f32.mrf.mxu0 }
0x13ed   :  { %v1209_v15 = vpop.eup %1208 }
0x13ee   :  { %819 = vrot.lane.b32.xlu0 %v1209_v15, %s1225_s0 }
0x13ef   :  { %v1211_v17 = vpop.eup %1210 }
0x13f0   :  { %v813_v18 = vadd.f32 1.0, %v1211_v17 }
0x13f2   :  { %1212 = vrcp.f32 %v813_v18 }
0x13ff   :  { %v1213_v19 = vpop.eup %1212 }
0x1400   :  { %v817_v23 = vmul.f32 %v1213_v19, %v754_v33 }
0x1460   :  { %v820_v20 = vpop.permute.xlu0 %819 }
0x1461   :  { %v822_v22 = vmul.f32 %v1213_v19, %v820_v20 }
0x1463   :  { %824 = vrot.lane.b32.xlu1 %v822_v22, %s1225_s0 }
0x14d5   :  { %v825_v25 = vpop.permute.xlu1 %824 }
0x14d6   :  { %v827_v37 = vadd.f32 %v825_v25, %v817_v23 }
0x14d8   :  { %1214 = vtanh.f32 %v827_v37 }
0x14e5   :  { %v1215_v27 = vpop.eup %1214 }
0x14e6   :  { %830 = vrot.lane.b32.xlu0 %v1215_v27, %s1225_s0 }
0x1558   :  { %v831_v26 = vpop.permute.xlu0 %830 }
0x1559   :  { %v833_v28 = vmul.f32 %v1213_v19, %v831_v26 }
0x155b   :  { %v834_v29 = vpack.c.bf16 %v833_v28, %v833_v28 }
0x155d   :  { %836 = vrot.lane.b32.xlu1 %v834_v29, %s1228_s29 }
0x15cf   :  { %v837_v31 = vpop.permute.xlu1 %836 }
0x15d0   :  { %1114 = vmatmul.mubr.msk.bf16.vlgmr.msra.gmra.mxu1 %vm271_vm2, %v837_v31 }
0x1690   :  { %v875_v32 = vpop.f32.mrf.mxu1 }
0x1691   :  { %v881_v34 = vadd.f32 %v875_v32, %v1330_v41 }
0x1692   :  { %v1115_v35 = vpop.f32.mrf.mxu1 }
0x1693   :  { %1216 = vtanh.f32 %v881_v34  ;;  %v1011_v40 = vmul.f32 -1.442695, %v881_v34 }
0x1694   :  { %v878_v36 = vpop.f32.mrf.mxu1 }
0x1695   :  { %1218 = vpow2.f32 %v1011_v40 }
0x1696   :  { %v1116_v38 = vpop.f32.mrf.mxu1 }
0x16a0   :  { %v1217_v39 = vpop.eup %1216 }
0x16a1   :  { %891 = vrot.lane.b32.xlu0 %v1217_v39, %s1225_s0 }
0x16a2   :  { %v1219_v42 = vpop.eup %1218 }
0x16a3   :  { %v885_v43 = vadd.f32 1.0, %v1219_v42 }
0x16a5   :  { %1220 = vrcp.f32 %v885_v43 }
0x16b2   :  { %v1221_v44 = vpop.eup %1220 }
0x16b3   :  { %v889_v46 = vmul.f32 %v1221_v44, %v827_v37 }
0x1713   :  { %v892_v45 = vpop.permute.xlu0 %891 }
0x1714   :  { %v894_v21 = vmul.f32 %v1221_v44, %v892_v45 }
0x1716   :  { %896 = vrot.lane.b32.xlu1 %v894_v21, %s1225_s0 }
0x1788   :  { %v897_v47 = vpop.permute.xlu1 %896 }
0x1789   :  { %v899_v41 = vadd.f32 %v897_v47, %v889_v46 }
0x178b   :  { %1222 = vtanh.f32 %v899_v41 }
0x1798   :  { %v1223_v49 = vpop.eup %1222 }
0x1799   :  { %902 = vrot.lane.b32.xlu0 %v1223_v49, %s1225_s0 }
0x180b   :  { %v903_v50 = vpop.permute.xlu0 %902 }
0x180c   :  { %v905_v51 = vmul.f32 %v1221_v44, %v903_v50 }
0x180e   :  { %v906_v52 = vpack.c.bf16 %v905_v51, %v905_v51 }
0x1810   :  { %912 = vrot.lane.b32.xlu1 %v906_v52, %s1228_s29 }
0x1882   :  { %v913_v53 = vpop.permute.xlu1 %912 }
0x1883   :  { %1122 = vmatmul.mubr.msk.bf16.vlgmr.msra.gmra.mxu0 %vm271_vm2, %v913_v53 }
0x1943   :  { %v963_v57 = vpop.f32.mrf.mxu0 }
0x1944   :  { %v964_v54 = vadd.f32 %v963_v57, %v310_v56 }
0x1945   :  { %v1123_v60 = vpop.f32.mrf.mxu0 }
0x1946   :  { %969 = vst [vmem:[%s1480_s6] sm:$0xff] %v964_v54 }
0x1947   :  { %v966_v61 = vpop.f32.mrf.mxu0 }
0x1949   :  { %v1124_v62 = vpop.f32.mrf.mxu0 }

</bundles_post_ra>
